<compile_context>
chip_gen: v5e
topology: v5e:2x2
jax: 0.10.0
libtpu: 0.0.40
codegen_flags: <defaults>
</compile_context>

<pallas_src>
import functools

import jax
import jax.numpy as jnp
from jax import lax
from jax.experimental import pallas as pl
from jax.experimental.pallas import tpu as pltpu

ALPHA = 1.0   # module default alpha=1
# gamma=2 (module default) is implemented as an explicit square below.


def _focal_loss_kernel(logits_ref, targets_ref, out_ref, *, n_valid, tile_n):
    pid = pl.program_id(0)

    logits = logits_ref[...].astype(jnp.float32)          # (tile_n, C)
    tgt = targets_ref[...]                                 # (tile_n, 1) int32

    # Numerically stable softmax pieces.
    m = jnp.max(logits, axis=-1, keepdims=True)            # (tile_n, 1)
    ex = jnp.exp(logits - m)                                # (tile_n, C)
    sum_exp = jnp.sum(ex, axis=-1, keepdims=True)           # (tile_n, 1)

    # Gather logits[target] via lane-iota compare (no dynamic gather on TPU).
    cls_idx = lax.broadcasted_iota(jnp.int32, logits.shape, 1)
    true_logit = jnp.sum(jnp.where(cls_idx == tgt, logits, 0.0),
                         axis=-1, keepdims=True)            # (tile_n, 1)

    # Per-sample cross entropy: CE = logsumexp(logits) - logits[target].
    ce = (jnp.log(sum_exp) + m) - true_logit                # (tile_n, 1)

    # pt = softmax(logits)[target] = exp(true_logit - m) / sum_exp.
    # Divide via EUP reciprocal (free slot while VPU/loads are busy).
    pt = jnp.exp(true_logit - m) * pl.reciprocal(sum_exp, approx=True)

    omp = 1.0 - pt
    f = ALPHA * omp * omp * ce                              # focal loss per row

    # Mask out zero-padded rows (global row index >= true N).
    row = pid * tile_n + lax.broadcasted_iota(jnp.int32, f.shape, 0)
    f = jnp.where(row < n_valid, f, 0.0)

    # Per-tile partial sum, broadcast into an (8,128)-aligned block so the
    # store is unmasked and every tile's output block is independent
    # ("parallel" grid axis -> megacore-friendly on v7x).
    out_ref[...] = jnp.full(out_ref.shape, jnp.sum(f), dtype=jnp.float32)


def _choose_tile_n(n, c):
    """Largest multiple-of-8 row tile keeping 2x double-buffered logits <=16MiB."""
    bytes_per_row = max(1, c) * 4
    budget = 16 * 1024 * 1024
    max_rows = max(8, budget // (2 * bytes_per_row))
    n_pad8 = ((n + 7) // 8) * 8
    tile = min(1024, max_rows, n_pad8)
    tile = max(8, (tile // 8) * 8)
    return tile


def focal_loss(logits, targets):
    """logits: (N, C) float, targets: (N,) int class indices -> scalar loss (mean)."""
    n, c = logits.shape
    tile_n = _choose_tile_n(n, c)
    num_tiles = pl.cdiv(n, tile_n)
    n_pad = num_tiles * tile_n

    logits = logits.astype(jnp.float32)
    targets = targets.astype(jnp.int32)
    if n_pad != n:
        logits = jnp.pad(logits, ((0, n_pad - n), (0, 0)))
        targets = jnp.pad(targets, (0, n_pad - n))
    tgt2d = targets.reshape(n_pad, 1)

    kernel = functools.partial(_focal_loss_kernel, n_valid=n, tile_n=tile_n)

    partials = pl.pallas_call(
        kernel,
        out_shape=jax.ShapeDtypeStruct((num_tiles, 8, 128), jnp.float32),
        grid=(num_tiles,),
        in_specs=[
            pl.BlockSpec((tile_n, c), lambda i: (i, 0)),   # logits tile
            pl.BlockSpec((tile_n, 1), lambda i: (i, 0)),   # target column
        ],
        out_specs=pl.BlockSpec((1, 8, 128), lambda i: (i, 0, 0)),
        compiler_params=pltpu.CompilerParams(
            dimension_semantics=("parallel",),
            vmem_limit_bytes=48 * 1024 * 1024,
        ),
    )(logits, tgt2d)

    # reduction='mean': multiply by precomputed 1/N (true N, not padded).
    inv_n = jnp.float32(1.0 / n)
    return jnp.sum(partials[:, 0, 0]) * inv_n


if __name__ == "__main__":
    key = jax.random.PRNGKey(0)
    k_logits, k_tgt = jax.random.split(key)

    # Small demo shapes consistent with F.cross_entropy((N, C), (N,)).
    # Note: C=16 only fills 16/128 lanes; for real workloads a larger C (or
    # fusing this op into surrounding JAX) is preferable — see perf notes.
    N, C = 8, 16
    logits = jax.random.normal(k_logits, (N, C), dtype=jnp.float32)
    targets = jax.random.randint(k_tgt, (N,), 0, C, dtype=jnp.int32)

    loss = focal_loss(logits, targets)
    jax.block_until_ready(loss)

    # Pure-JAX reference (same math as the PyTorch module).
    log_probs = jax.nn.log_softmax(logits, axis=-1)
    ce_ref = -jnp.take_along_axis(log_probs, targets[:, None], axis=-1)[:, 0]
    pt_ref = jnp.exp(-ce_ref)
    ref = jnp.mean(ALPHA * (1.0 - pt_ref) ** 2 * ce_ref)

    # Tolerance accounts for the EUP approximate-reciprocal used for pt.
    assert jnp.allclose(loss, ref, atol=2e-3, rtol=2e-3), (loss, ref)

    print("KERNEL_OK")
</pallas_src>

<mosaic_0001>
module attributes {stable_mosaic.version = 11 : i64} {
  func.func @_focal_loss_kernel(%arg0: i32, %arg1: memref<8x16xf32, #tpu.memory_space<vmem>>, %arg2: memref<8x1xi32, #tpu.memory_space<vmem>>, %arg3: memref<1x8x128xf32, #tpu.memory_space<vmem>>) attributes {dimension_semantics = [#tpu.dimension_semantics<parallel>], iteration_bounds = array<i64: 1>, scalar_prefetch = 0 : i64, scratch_operands = 0 : i64, tpu.core_type = #tpu.core_type<tc>, window_params = [{transform_indices = @transform_0, window_bounds = array<i64: 8, 16>}, {transform_indices = @transform_1, window_bounds = array<i64: 8, 1>}, {transform_indices = @transform_2, window_bounds = array<i64: 1, 8, 128>}]} {
    %c0 = arith.constant 0 : index
    %c0_0 = arith.constant 0 : index
    %0 = vector.load %arg1[%c0, %c0_0] : memref<8x16xf32, #tpu.memory_space<vmem>>, vector<8x16xf32>
    %c0_1 = arith.constant 0 : index
    %c0_2 = arith.constant 0 : index
    %1 = vector.load %arg2[%c0_1, %c0_2] : memref<8x1xi32, #tpu.memory_space<vmem>>, vector<8x1xi32>
    %cst = arith.constant dense<0xFF800000> : vector<8xf32>
    %2 = vector.multi_reduction <maximumf>, %0, %cst [1] : vector<8x16xf32> to vector<8xf32>
    %3 = vector.shape_cast %2 : vector<8xf32> to vector<8x1xf32>
    %4 = vector.broadcast %3 : vector<8x1xf32> to vector<8x16xf32>
    %5 = arith.subf %0, %4 : vector<8x16xf32>
    %6 = math.exp %5 : vector<8x16xf32>
    %cst_3 = arith.constant dense<0.000000e+00> : vector<8xf32>
    %7 = vector.multi_reduction <add>, %6, %cst_3 [1] : vector<8x16xf32> to vector<8xf32>
    %8 = vector.shape_cast %7 : vector<8xf32> to vector<8x1xf32>
    %9 = tpu.iota {dimensions = array<i32: 1>} : vector<8x16xi32>
    %10 = vector.broadcast %1 : vector<8x1xi32> to vector<8x16xi32>
    %11 = arith.cmpi eq, %9, %10 : vector<8x16xi32>
    %cst_4 = arith.constant 0.000000e+00 : f32
    %12 = vector.broadcast %cst_4 : f32 to vector<8x16xf32>
    %13 = arith.select %11, %0, %12 : vector<8x16xi1>, vector<8x16xf32>
    %cst_5 = arith.constant dense<0.000000e+00> : vector<8xf32>
    %14 = vector.multi_reduction <add>, %13, %cst_5 [1] : vector<8x16xf32> to vector<8xf32>
    %15 = vector.shape_cast %14 : vector<8xf32> to vector<8x1xf32>
    %16 = math.log %8 : vector<8x1xf32>
    %17 = arith.addf %16, %3 : vector<8x1xf32>
    %18 = arith.subf %17, %15 : vector<8x1xf32>
    %19 = arith.subf %15, %3 : vector<8x1xf32>
    %20 = math.exp %19 : vector<8x1xf32>
    %21 = tpu.reciprocal %8 {approx = true} : vector<8x1xf32> -> vector<8x1xf32>
    %22 = arith.mulf %20, %21 : vector<8x1xf32>
    %cst_6 = arith.constant 1.000000e+00 : f32
    %23 = vector.broadcast %cst_6 : f32 to vector<8x1xf32>
    %24 = arith.subf %23, %22 : vector<8x1xf32>
    %cst_7 = arith.constant 1.000000e+00 : f32
    %25 = vector.broadcast %cst_7 : f32 to vector<8x1xf32>
    %26 = arith.mulf %25, %24 : vector<8x1xf32>
    %27 = arith.mulf %26, %24 : vector<8x1xf32>
    %28 = arith.mulf %27, %18 : vector<8x1xf32>
    %c8_i32 = arith.constant 8 : i32
    %29 = arith.muli %arg0, %c8_i32 : i32
    %30 = tpu.iota {dimensions = array<i32: 0>} : vector<8x1xi32>
    %31 = vector.broadcast %29 : i32 to vector<8x1xi32>
    %32 = arith.addi %31, %30 : vector<8x1xi32>
    %c8_i32_8 = arith.constant 8 : i32
    %33 = vector.broadcast %c8_i32_8 : i32 to vector<8x1xi32>
    %34 = arith.cmpi slt, %32, %33 : vector<8x1xi32>
    %cst_9 = arith.constant 0.000000e+00 : f32
    %35 = vector.broadcast %cst_9 : f32 to vector<8x1xf32>
    %36 = arith.select %34, %28, %35 : vector<8x1xi1>, vector<8x1xf32>
    %37 = vector.shape_cast %36 : vector<8x1xf32> to vector<1x8x1xf32>
    %cst_10 = arith.constant dense<0.000000e+00> : vector<1xf32>
    %38 = vector.multi_reduction <add>, %37, %cst_10 [1, 2] : vector<1x8x1xf32> to vector<1xf32>
    %39 = vector.shape_cast %38 : vector<1xf32> to vector<1x1x1xf32>
    %40 = vector.extract %39[0, 0, 0] : f32 from vector<1x1x1xf32>
    %41 = vector.broadcast %40 : f32 to vector<1x8x128xf32>
    %c0_11 = arith.constant 0 : index
    %c0_12 = arith.constant 0 : index
    %c0_13 = arith.constant 0 : index
    %42 = vector.load %arg3[%c0_11, %c0_12, %c0_13] : memref<1x8x128xf32, #tpu.memory_space<vmem>>, vector<1x8x128xf32>
    tpu.vector_store %arg3[%c0_11, %c0_12, %c0_13], %41 {strides = array<i32>} : memref<1x8x128xf32, #tpu.memory_space<vmem>>, vector<1x8x128xf32>,
    return
  }
  func.func @transform_0(%arg0: i32) -> (i32, i32) {
    %c0_i32 = arith.constant 0 : i32
    %c0_i32_0 = arith.constant 0 : i32
    return %arg0, %c0_i32 : i32, i32
  }
  func.func @transform_1(%arg0: i32) -> (i32, i32) {
    %c0_i32 = arith.constant 0 : i32
    %c0_i32_0 = arith.constant 0 : i32
    return %arg0, %c0_i32 : i32, i32
  }
  func.func @transform_2(%arg0: i32) -> (i32, i32, i32) {
    %c0_i32 = arith.constant 0 : i32
    %c0_i32_0 = arith.constant 0 : i32
    %c0_i32_1 = arith.constant 0 : i32
    return %arg0, %c0_i32, %c0_i32_0 : i32, i32, i32
  }
}

</mosaic_0001>

<bundles_post_ra>
// kernel: tpu_custom_call.1
= control target key start
LH: loop header
LB: loop body
LE: loop exit
PB: predicated region body
PF: predicated region fallthrough
CT: control target
= control target key end

     0   :  { %vm14_vm0 = vcmask 130048   ;;  %s150_s0 = inlined_call_operand.vmem [shape: f32[8,16], index: 0, kind: input, shape index: {}]   ;;  %s151_s1 = inlined_call_operand.vmem [shape: s32[8,1], index: 1, kind: input, shape index: {}]   ;;  %s152_s2 = inlined_call_operand.hbm [shape: f32[1,8,128], index: 2, kind: output, shape index: {}]  }
   0x1   :  { %v12_v0 = vld [vmem:[%s150_s0] sm:$0xff] }
   0x2   :  { %7 = vsyncpa [#allocation3], 0  ;;  %v15_v1 = vsel %vm14_vm0, %v12_v0, -inf  ;;  %v121_v2 = vmov 0   ;;  %v13_v3 = vld [vmem:[%s151_s1] sm:$0xff]  ;;  %v24_v5 = vlaneseq  ;;  %vm53_vm2 = vcmask 7168  }
   0x3   :  { %86 = vset.pattern.permute.xlu0 %v121_v2  ;;  %s122_s0 = smov [#allocation2]   ;;  %s73_s15 = sshll.u32 %s152_s2, 4  ;;  %s74_s15 = int_to_ptr.hbm [resolvable:$true] %s73_s15 }
   0x4   :  { %16 = vmax.xlane.f32.xlu0 %v15_v1  ;;  %v25_v7 = vand.u32 127, %v24_v5  ;;  %s71_s1 = sshll.u32 %s122_s0, 4  ;;  %s72_s1 = int_to_ptr.vmem [resolvable:$true] %s71_s1 }
  0x18   :  { %27 = vperm.xlu0 %86, %v13_v3  }
  0x77   :  { %v17_v4 = vpop.xlane.xlu0 %16 }
  0x78   :  { %v18_v6 = vsub.f32 %v12_v0, %v17_v4 }
  0x7a   :  { %v19_v8 = vmul.f32 1.442695, %v18_v6 }
  0x7c   :  { %87 = vpow2.f32 %v19_v8 }
  0x82   :  { %v88_v12 = vpop.eup %87 }
  0x83   :  { %v21_v13 = vsel %vm14_vm0, %v88_v12, 0.0 }
  0x8a   :  { %v28_v9 = vpop.permute.xlu0 %27 }
  0x8b   :  { %vm29_vm1 = vcmp.eq.s32.totalorder %v25_v7, %v28_v9 }
  0x8c   :  { %v30_v10 = vsel %vm29_vm1, %v12_v0, 0.0 }
  0x8d   :  { %v31_v11 = vsel %vm14_vm0, %v30_v10, 0.0 }
  0x8e   :  { %32 = vadd.xlane.f32.xlu1 %v31_v11 }
  0x96   :  { %22 = vadd.xlane.f32.xlu1 %v21_v13 }
 0x101   :  { %v33_v14 = vpop.xlane.xlu1 %32 }
 0x102   :  { %v38_v15 = vsub.f32 %v33_v14, %v17_v4 }
 0x104   :  { %v39_v16 = vmul.f32 1.442695, %v38_v15 }
 0x106   :  { %89 = vpow2.f32 %v39_v16 }
 0x109   :  { %v23_v17 = vpop.xlane.xlu1 %22 }
 0x10a   :  { %91 = vlog2.f32 %v23_v17 }
 0x10b   :  { %93 = vrcp.f32 %v23_v17 }
 0x10c   :  { %v90_v18 = vpop.eup %89 }
 0x110   :  { %v92_v19 = vpop.eup %91 }
 0x111   :  { %v94_v20 = vpop.eup %93  ;;  %v35_v21 = vmul.f32 0.6931472, %v92_v19 }
 0x112   :  { %v42_v22 = vmul.f32 %v94_v20, %v90_v18 }
 0x113   :  { %v36_v23 = vadd.f32 %v35_v21, %v17_v4 }
 0x114   :  { %v43_v24 = vsub.f32 1.0, %v42_v22 }
 0x115   :  { %v37_v25 = vsub.f32 %v36_v23, %v33_v14 }
 0x116   :  { %v44_v26 = vmul.f32 %v43_v24, %v43_v24 }
 0x118   :  { %v45_v27 = vmul.f32 %v44_v26, %v37_v25 }
 0x11a   :  { %v54_v28 = vsel %vm53_vm2, %v45_v27, 0.0 }
 0x11b   :  { %55 = vadd.xlane.f32.xlu2 %v54_v28 }
 0x18e   :  { %v56_v29 = vpop.xlane.xlu2 %55 }
 0x18f   :  { %v57_v30 = vrot.slane %v56_v29, 4 }
 0x191   :  { %v58_v31 = vadd.f32 %v57_v30, %v56_v29 }
 0x193   :  { %v59_v32 = vrot.slane %v58_v31, 2 }
 0x195   :  { %v60_v33 = vadd.f32 %v59_v32, %v58_v31 }
 0x197   :  { %v61_v34 = vrot.slane %v60_v33, 1 }
 0x199   :  { %v62_v35 = vadd.f32 %v61_v34, %v60_v33 }
 0x19b   :  { %82 = vpush %v62_v35 }
 0x1cc   :  { %s83_s16 = spop %82 }
 0x1cd   :  { %v64_v36 = vstv %s83_s16 }
 0x1ce   :  { %65 = vst [vmem:[#allocation2] sm:$0xff] %v64_v36 }
 0x1cf   :  { %76 = dma.vmem_to_hbm [thread:$0]  %s72_s1, 128, %s74_s15, [#allocation3]  }
 0x1d0   :  { %119 = dma.done.wait [#allocation3], 128  }
 0x1d1   :  { %120 = vsyncadd [#allocation3], 4294967168 }
 0x1d2   :  { %81 = vsyncpa [#allocation3], 1 }

</bundles_post_ra>
